<compile_context>
chip_gen: v7x
topology: tpu7x:2x2x1
jax: 0.10.0
libtpu: 0.0.40
codegen_flags: <defaults>
</compile_context>

<pallas_src>
import jax
import jax.numpy as jnp
import numpy as np
from jax.experimental import pallas as pl
from jax.experimental.pallas import tpu as pltpu


def _encoder_kernel(x_ref, w1_ref, b1_ref, w2_ref, b2_ref, g_ref, beta_ref,
                    w3_ref, b3_ref, wl1_ref, bl1_ref, wl23_ref, bl23_ref,
                    eps_ref, z_ref, kl_ref):
    f32, bf16 = jnp.float32, jnp.bfloat16
    N, L = eps_ref.shape
    NW, H = x_ref.shape
    W = NW // N
    W1, W2, W3 = W - 3, W - 6, W - 9

    x = x_ref[...]                                             # (N*W, H) f32

    def im2col(h, width_in, width_out):
        # h: (N*width_in, C) -> (N*width_out, 4*C); column order kh*C + c
        # matches the kh-major packing of the conv weights.
        rows = []
        for n in range(N):
            base = n * width_in
            rows.append(jnp.concatenate(
                [h[base + kh: base + kh + width_out, :] for kh in range(4)],
                axis=-1))
        return jnp.concatenate(rows, axis=0)

    # ---- conv1 (1->8, kernel (4,H)) + ReLU: one (N*W1, 4H) @ (4H, 8) matmul ----
    a1 = jnp.dot(im2col(x, W, W1).astype(bf16), w1_ref[...],
                 preferred_element_type=f32)
    h1 = jnp.maximum(a1 + b1_ref[...], 0.0)                    # (N*W1, 8)

    # ---- conv2 (8->16, kernel (4,1)) pre-activation ----
    h2 = jnp.dot(im2col(h1, W1, W2).astype(bf16), w2_ref[...],
                 preferred_element_type=f32) + b2_ref[...]     # (N*W2, 16)

    # ---- BatchNorm2d(16): batch statistics over all N*W2 positions ----
    inv_cnt = 1.0 / float(N * W2)
    mean = jnp.sum(h2, axis=0, keepdims=True) * inv_cnt        # (1, 16)
    var = jnp.sum((h2 - mean) ** 2, axis=0, keepdims=True) * inv_cnt
    inv_std = jax.lax.rsqrt(var + 1e-5)
    h2n = jnp.maximum((h2 - mean) * inv_std * g_ref[...] + beta_ref[...], 0.0)

    # ---- conv3 (16->32, kernel (4,1)) + ReLU ----
    a3 = jnp.dot(im2col(h2n, W2, W3).astype(bf16), w3_ref[...],
                 preferred_element_type=f32)
    h3 = jnp.maximum(a3 + b3_ref[...], 0.0)                    # (N*W3, 32)

    # ---- flatten to (N, 32*W3); column order w*32 + c matches pre-permuted wl1 ----
    flat = jnp.concatenate(
        [jnp.concatenate([h3[n * W3 + w: n * W3 + w + 1, :] for w in range(W3)],
                         axis=-1)
         for n in range(N)], axis=0)                           # (N, 32*W3)

    # ---- linear1 + ReLU: one (N, 32*W3) @ (32*W3, 128) matmul ----
    hl1 = jnp.maximum(jnp.dot(flat.astype(bf16), wl1_ref[...],
                              preferred_element_type=f32) + bl1_ref[...], 0.0)

    # ---- fused mu / log_sigma head: one (N, 128) @ (128, 2L) matmul ----
    head = jnp.dot(hl1.astype(bf16), wl23_ref[...],
                   preferred_element_type=f32) + bl23_ref[...]  # (N, 2L)
    mu = head[:, :L]
    log_sig = head[:, L:]
    sigma = jnp.exp(log_sig)

    # ---- reparameterize (single full-block store) + KL (uses log_sig directly) ----
    z_ref[...] = mu + sigma * eps_ref[...]
    kl_term = 0.5 * sigma + 0.5 * mu * mu - 0.5 * log_sig - 0.5
    kl_ref[...] = jnp.sum(jnp.sum(kl_term, axis=1, keepdims=True),
                          axis=0, keepdims=True)               # (1, 1)


def variational_encoder_forward(x_nchw, kp, eps):
    """x_nchw: (N, 1, wide, height) f32.  Returns (z, kl)."""
    N, C, W, H = x_nchw.shape
    assert C == 1
    x2d = x_nchw.reshape(N * W, H)                 # per-sample rows at n*W + w
    L = eps.shape[-1]

    vspec = pl.BlockSpec(memory_space=pltpu.MemorySpace.VMEM)
    args = (x2d, kp["w1"], kp["b1"], kp["w2"], kp["b2"], kp["gamma"], kp["beta"],
            kp["w3"], kp["b3"], kp["wl1"], kp["bl1"], kp["wl23"], kp["bl23"], eps)

    z, kl = pl.pallas_call(
        _encoder_kernel,
        out_shape=(jax.ShapeDtypeStruct((N, L), jnp.float32),
                   jax.ShapeDtypeStruct((1, 1), jnp.float32)),
        in_specs=[vspec] * len(args),
        out_specs=(vspec, vspec),
    )(*args)
    return z, kl[0, 0]


# ---------------- deterministic parameter construction (glue) ----------------

def init_torch_params(key, latent_dims, height, wide):
    W3 = wide - 9
    keys = jax.random.split(key, 12)

    def u(k, shape, fan_in):
        b = 1.0 / np.sqrt(fan_in)
        return jax.random.uniform(k, shape, jnp.float32, -b, b)

    return {
        "w1": u(keys[0], (8, 1, 4, height), 1 * 4 * height),
        "b1": u(keys[1], (8,), 1 * 4 * height),
        "w2": u(keys[2], (16, 8, 4, 1), 8 * 4),
        "b2": u(keys[3], (16,), 8 * 4),
        "gamma": jnp.ones((16,), jnp.float32),
        "beta": jnp.zeros((16,), jnp.float32),
        "w3": u(keys[4], (32, 16, 4, 1), 16 * 4),
        "b3": u(keys[5], (32,), 16 * 4),
        "wl1": u(keys[6], (128, 32 * W3), 32 * W3),
        "bl1": u(keys[7], (128,), 32 * W3),
        "wl2": u(keys[8], (latent_dims, 128), 128),
        "bl2": u(keys[9], (latent_dims,), 128),
        "wl3": u(keys[10], (latent_dims, 128), 128),
        "bl3": u(keys[11], (latent_dims,), 128),
    }


def to_kernel_params(tp, height, wide):
    """Pack weights into matmul-ready matrices; matmul operands pre-cast to bf16."""
    W3 = wide - 9
    bf16 = jnp.bfloat16
    wl23 = jnp.concatenate([tp["wl2"].T, tp["wl3"].T], axis=1)         # (128, 2L)
    bl23 = jnp.concatenate([tp["bl2"].reshape(1, -1),
                            tp["bl3"].reshape(1, -1)], axis=1)          # (1, 2L)
    return {
        "w1": tp["w1"].reshape(8, 4 * height).T.astype(bf16),                      # (4H, 8)
        "b1": tp["b1"].reshape(1, 8),
        "w2": tp["w2"][:, :, :, 0].transpose(2, 1, 0).reshape(4 * 8, 16).astype(bf16),   # (32, 16)
        "b2": tp["b2"].reshape(1, 16),
        "gamma": tp["gamma"].reshape(1, 16),
        "beta": tp["beta"].reshape(1, 16),
        "w3": tp["w3"][:, :, :, 0].transpose(2, 1, 0).reshape(4 * 16, 32).astype(bf16),  # (64, 32)
        "b3": tp["b3"].reshape(1, 32),
        "wl1": tp["wl1"].reshape(128, 32, W3).transpose(2, 1, 0)
                        .reshape(32 * W3, 128).astype(bf16),                        # (32*W3, 128)
        "bl1": tp["bl1"].reshape(1, 128),
        "wl23": wl23.astype(bf16),
        "bl23": bl23,
    }


# ---------------- pure-JAX reference (torch semantics) for validation ----------------

def reference_forward(x, tp, eps):
    def conv2d(h, w, b):
        y = jax.lax.conv_general_dilated(
            h, w, (1, 1), "VALID",
            dimension_numbers=("NCHW", "OIHW", "NCHW"),
            precision=jax.lax.Precision.HIGHEST)
        return y + b[None, :, None, None]

    h = jax.nn.relu(conv2d(x, tp["w1"], tp["b1"]))
    h = conv2d(h, tp["w2"], tp["b2"])
    mean = jnp.mean(h, axis=(0, 2, 3), keepdims=True)
    var = jnp.mean((h - mean) ** 2, axis=(0, 2, 3), keepdims=True)
    h = (h - mean) / jnp.sqrt(var + 1e-5)
    h = jax.nn.relu(h * tp["gamma"][None, :, None, None] + tp["beta"][None, :, None, None])
    h = jax.nn.relu(conv2d(h, tp["w3"], tp["b3"]))
    h = h.reshape(h.shape[0], -1)                       # == torch.flatten(start_dim=1)
    h = jax.nn.relu(h @ tp["wl1"].T + tp["bl1"])
    mu = h @ tp["wl2"].T + tp["bl2"]
    sigma = jnp.exp(h @ tp["wl3"].T + tp["bl3"])
    z = mu + sigma * eps
    kl = jnp.sum(0.5 * sigma + 0.5 * mu ** 2 - 0.5 * jnp.log(sigma) - 0.5)
    return z, kl


if __name__ == "__main__":
    latent_dims, height, wide, batch = 8, 16, 16, 2

    key = jax.random.PRNGKey(0)
    kparam, kx, keps = jax.random.split(key, 3)

    tp = init_torch_params(kparam, latent_dims, height, wide)
    kp = to_kernel_params(tp, height, wide)

    x = jax.random.normal(kx, (batch, 1, wide, height), jnp.float32)
    eps = jax.random.normal(keps, (batch, latent_dims), jnp.float32)

    z, kl = variational_encoder_forward(x, kp, eps)
    jax.block_until_ready((z, kl))

    z_ref, kl_ref = reference_forward(x, tp, eps)
    np.testing.assert_allclose(np.asarray(z), np.asarray(z_ref), rtol=2e-2, atol=2e-2)
    np.testing.assert_allclose(float(kl), float(kl_ref), rtol=2e-2, atol=2e-2)

    print("KERNEL_OK")
</pallas_src>

<mosaic_0001>
module attributes {stable_mosaic.version = 11 : i64} {
  func.func @_encoder_kernel(%arg0: memref<32x16xf32, #tpu.memory_space<vmem>>, %arg1: memref<64x8xbf16, #tpu.memory_space<vmem>>, %arg2: memref<1x8xf32, #tpu.memory_space<vmem>>, %arg3: memref<32x16xbf16, #tpu.memory_space<vmem>>, %arg4: memref<1x16xf32, #tpu.memory_space<vmem>>, %arg5: memref<1x16xf32, #tpu.memory_space<vmem>>, %arg6: memref<1x16xf32, #tpu.memory_space<vmem>>, %arg7: memref<64x32xbf16, #tpu.memory_space<vmem>>, %arg8: memref<1x32xf32, #tpu.memory_space<vmem>>, %arg9: memref<224x128xbf16, #tpu.memory_space<vmem>>, %arg10: memref<1x128xf32, #tpu.memory_space<vmem>>, %arg11: memref<128x16xbf16, #tpu.memory_space<vmem>>, %arg12: memref<1x16xf32, #tpu.memory_space<vmem>>, %arg13: memref<2x8xf32, #tpu.memory_space<vmem>>, %arg14: memref<2x8xf32, #tpu.memory_space<vmem>>, %arg15: memref<1x1xf32, #tpu.memory_space<vmem>>) attributes {dimension_semantics = [], scalar_prefetch = 0 : i64, scratch_operands = 0 : i64, tpu.core_type = #tpu.core_type<tc>} {
    %c0 = arith.constant 0 : index
    %c0_0 = arith.constant 0 : index
    %0 = vector.load %arg0[%c0, %c0_0] : memref<32x16xf32, #tpu.memory_space<vmem>>, vector<32x16xf32>
    %1 = vector.extract_strided_slice %0 {offsets = [0, 0], sizes = [13, 16], strides = [1, 1]} : vector<32x16xf32> to vector<13x16xf32>
    %2 = vector.extract_strided_slice %0 {offsets = [1, 0], sizes = [13, 16], strides = [1, 1]} : vector<32x16xf32> to vector<13x16xf32>
    %3 = vector.extract_strided_slice %0 {offsets = [2, 0], sizes = [13, 16], strides = [1, 1]} : vector<32x16xf32> to vector<13x16xf32>
    %4 = vector.extract_strided_slice %0 {offsets = [3, 0], sizes = [13, 16], strides = [1, 1]} : vector<32x16xf32> to vector<13x16xf32>
    %5 = tpu.concatenate %1, %2, %3, %4 in 1 : vector<13x16xf32>, vector<13x16xf32>, vector<13x16xf32>, vector<13x16xf32> -> vector<13x64xf32>
    %6 = vector.extract_strided_slice %0 {offsets = [16, 0], sizes = [13, 16], strides = [1, 1]} : vector<32x16xf32> to vector<13x16xf32>
    %7 = vector.extract_strided_slice %0 {offsets = [17, 0], sizes = [13, 16], strides = [1, 1]} : vector<32x16xf32> to vector<13x16xf32>
    %8 = vector.extract_strided_slice %0 {offsets = [18, 0], sizes = [13, 16], strides = [1, 1]} : vector<32x16xf32> to vector<13x16xf32>
    %9 = vector.extract_strided_slice %0 {offsets = [19, 0], sizes = [13, 16], strides = [1, 1]} : vector<32x16xf32> to vector<13x16xf32>
    %10 = tpu.concatenate %6, %7, %8, %9 in 1 : vector<13x16xf32>, vector<13x16xf32>, vector<13x16xf32>, vector<13x16xf32> -> vector<13x64xf32>
    %11 = tpu.concatenate %5, %10 in 0 : vector<13x64xf32>, vector<13x64xf32> -> vector<26x64xf32>
    %12 = arith.truncf %11 : vector<26x64xf32> to vector<26x64xbf16>
    %c0_1 = arith.constant 0 : index
    %c0_2 = arith.constant 0 : index
    %13 = vector.load %arg1[%c0_1, %c0_2] : memref<64x8xbf16, #tpu.memory_space<vmem>>, vector<64x8xbf16>
    %cst = arith.constant dense<0.000000e+00> : vector<26x8xf32>
    %14 = tpu.matmul %12, %13, %cst {dimension_numbers = #tpu.dot_dimension_numbers<[1], [0], [0], [1], [0, 0, 1, 1], [], []>} : vector<26x64xbf16>, vector<64x8xbf16>, vector<26x8xf32> -> vector<26x8xf32>
    %c0_3 = arith.constant 0 : index
    %c0_4 = arith.constant 0 : index
    %15 = vector.load %arg2[%c0_3, %c0_4] : memref<1x8xf32, #tpu.memory_space<vmem>>, vector<1x8xf32>
    %16 = vector.broadcast %15 : vector<1x8xf32> to vector<26x8xf32>
    %17 = arith.addf %14, %16 : vector<26x8xf32>
    %cst_5 = arith.constant 0.000000e+00 : f32
    %18 = vector.broadcast %cst_5 : f32 to vector<26x8xf32>
    %19 = arith.maximumf %17, %18 : vector<26x8xf32>
    %20 = vector.extract_strided_slice %19 {offsets = [0, 0], sizes = [10, 8], strides = [1, 1]} : vector<26x8xf32> to vector<10x8xf32>
    %21 = vector.extract_strided_slice %19 {offsets = [1, 0], sizes = [10, 8], strides = [1, 1]} : vector<26x8xf32> to vector<10x8xf32>
    %22 = vector.extract_strided_slice %19 {offsets = [2, 0], sizes = [10, 8], strides = [1, 1]} : vector<26x8xf32> to vector<10x8xf32>
    %23 = vector.extract_strided_slice %19 {offsets = [3, 0], sizes = [10, 8], strides = [1, 1]} : vector<26x8xf32> to vector<10x8xf32>
    %24 = tpu.concatenate %20, %21, %22, %23 in 1 : vector<10x8xf32>, vector<10x8xf32>, vector<10x8xf32>, vector<10x8xf32> -> vector<10x32xf32>
    %25 = vector.extract_strided_slice %19 {offsets = [13, 0], sizes = [10, 8], strides = [1, 1]} : vector<26x8xf32> to vector<10x8xf32>
    %26 = vector.extract_strided_slice %19 {offsets = [14, 0], sizes = [10, 8], strides = [1, 1]} : vector<26x8xf32> to vector<10x8xf32>
    %27 = vector.extract_strided_slice %19 {offsets = [15, 0], sizes = [10, 8], strides = [1, 1]} : vector<26x8xf32> to vector<10x8xf32>
    %28 = vector.extract_strided_slice %19 {offsets = [16, 0], sizes = [10, 8], strides = [1, 1]} : vector<26x8xf32> to vector<10x8xf32>
    %29 = tpu.concatenate %25, %26, %27, %28 in 1 : vector<10x8xf32>, vector<10x8xf32>, vector<10x8xf32>, vector<10x8xf32> -> vector<10x32xf32>
    %30 = tpu.concatenate %24, %29 in 0 : vector<10x32xf32>, vector<10x32xf32> -> vector<20x32xf32>
    %31 = arith.truncf %30 : vector<20x32xf32> to vector<20x32xbf16>
    %c0_6 = arith.constant 0 : index
    %c0_7 = arith.constant 0 : index
    %32 = vector.load %arg3[%c0_6, %c0_7] : memref<32x16xbf16, #tpu.memory_space<vmem>>, vector<32x16xbf16>
    %cst_8 = arith.constant dense<0.000000e+00> : vector<20x16xf32>
    %33 = tpu.matmul %31, %32, %cst_8 {dimension_numbers = #tpu.dot_dimension_numbers<[1], [0], [0], [1], [0, 0, 1, 1], [], []>} : vector<20x32xbf16>, vector<32x16xbf16>, vector<20x16xf32> -> vector<20x16xf32>
    %c0_9 = arith.constant 0 : index
    %c0_10 = arith.constant 0 : index
    %34 = vector.load %arg4[%c0_9, %c0_10] : memref<1x16xf32, #tpu.memory_space<vmem>>, vector<1x16xf32>
    %35 = vector.broadcast %34 : vector<1x16xf32> to vector<20x16xf32>
    %36 = arith.addf %33, %35 : vector<20x16xf32>
    %cst_11 = arith.constant dense<0.000000e+00> : vector<16xf32>
    %37 = vector.multi_reduction <add>, %36, %cst_11 [0] : vector<20x16xf32> to vector<16xf32>
    %38 = vector.shape_cast %37 : vector<16xf32> to vector<1x16xf32>
    %cst_12 = arith.constant 5.000000e-02 : f32
    %39 = vector.broadcast %cst_12 : f32 to vector<1x16xf32>
    %40 = arith.mulf %38, %39 : vector<1x16xf32>
    %41 = vector.broadcast %40 : vector<1x16xf32> to vector<20x16xf32>
    %42 = arith.subf %36, %41 : vector<20x16xf32>
    %43 = arith.mulf %42, %42 : vector<20x16xf32>
    %cst_13 = arith.constant dense<0.000000e+00> : vector<16xf32>
    %44 = vector.multi_reduction <add>, %43, %cst_13 [0] : vector<20x16xf32> to vector<16xf32>
    %45 = vector.shape_cast %44 : vector<16xf32> to vector<1x16xf32>
    %cst_14 = arith.constant 5.000000e-02 : f32
    %46 = vector.broadcast %cst_14 : f32 to vector<1x16xf32>
    %47 = arith.mulf %45, %46 : vector<1x16xf32>
    %cst_15 = arith.constant 9.99999974E-6 : f32
    %48 = vector.broadcast %cst_15 : f32 to vector<1x16xf32>
    %49 = arith.addf %47, %48 : vector<1x16xf32>
    %50 = math.rsqrt %49 : vector<1x16xf32>
    %51 = vector.broadcast %40 : vector<1x16xf32> to vector<20x16xf32>
    %52 = arith.subf %36, %51 : vector<20x16xf32>
    %53 = vector.broadcast %50 : vector<1x16xf32> to vector<20x16xf32>
    %54 = arith.mulf %52, %53 : vector<20x16xf32>
    %c0_16 = arith.constant 0 : index
    %c0_17 = arith.constant 0 : index
    %55 = vector.load %arg5[%c0_16, %c0_17] : memref<1x16xf32, #tpu.memory_space<vmem>>, vector<1x16xf32>
    %56 = vector.broadcast %55 : vector<1x16xf32> to vector<20x16xf32>
    %57 = arith.mulf %54, %56 : vector<20x16xf32>
    %c0_18 = arith.constant 0 : index
    %c0_19 = arith.constant 0 : index
    %58 = vector.load %arg6[%c0_18, %c0_19] : memref<1x16xf32, #tpu.memory_space<vmem>>, vector<1x16xf32>
    %59 = vector.broadcast %58 : vector<1x16xf32> to vector<20x16xf32>
    %60 = arith.addf %57, %59 : vector<20x16xf32>
    %cst_20 = arith.constant 0.000000e+00 : f32
    %61 = vector.broadcast %cst_20 : f32 to vector<20x16xf32>
    %62 = arith.maximumf %60, %61 : vector<20x16xf32>
    %63 = vector.extract_strided_slice %62 {offsets = [0, 0], sizes = [7, 16], strides = [1, 1]} : vector<20x16xf32> to vector<7x16xf32>
    %64 = vector.extract_strided_slice %62 {offsets = [1, 0], sizes = [7, 16], strides = [1, 1]} : vector<20x16xf32> to vector<7x16xf32>
    %65 = vector.extract_strided_slice %62 {offsets = [2, 0], sizes = [7, 16], strides = [1, 1]} : vector<20x16xf32> to vector<7x16xf32>
    %66 = vector.extract_strided_slice %62 {offsets = [3, 0], sizes = [7, 16], strides = [1, 1]} : vector<20x16xf32> to vector<7x16xf32>
    %67 = tpu.concatenate %63, %64, %65, %66 in 1 : vector<7x16xf32>, vector<7x16xf32>, vector<7x16xf32>, vector<7x16xf32> -> vector<7x64xf32>
    %68 = vector.extract_strided_slice %62 {offsets = [10, 0], sizes = [7, 16], strides = [1, 1]} : vector<20x16xf32> to vector<7x16xf32>
    %69 = vector.extract_strided_slice %62 {offsets = [11, 0], sizes = [7, 16], strides = [1, 1]} : vector<20x16xf32> to vector<7x16xf32>
    %70 = vector.extract_strided_slice %62 {offsets = [12, 0], sizes = [7, 16], strides = [1, 1]} : vector<20x16xf32> to vector<7x16xf32>
    %71 = vector.extract_strided_slice %62 {offsets = [13, 0], sizes = [7, 16], strides = [1, 1]} : vector<20x16xf32> to vector<7x16xf32>
    %72 = tpu.concatenate %68, %69, %70, %71 in 1 : vector<7x16xf32>, vector<7x16xf32>, vector<7x16xf32>, vector<7x16xf32> -> vector<7x64xf32>
    %73 = tpu.concatenate %67, %72 in 0 : vector<7x64xf32>, vector<7x64xf32> -> vector<14x64xf32>
    %74 = arith.truncf %73 : vector<14x64xf32> to vector<14x64xbf16>
    %c0_21 = arith.constant 0 : index
    %c0_22 = arith.constant 0 : index
    %75 = vector.load %arg7[%c0_21, %c0_22] : memref<64x32xbf16, #tpu.memory_space<vmem>>, vector<64x32xbf16>
    %cst_23 = arith.constant dense<0.000000e+00> : vector<14x32xf32>
    %76 = tpu.matmul %74, %75, %cst_23 {dimension_numbers = #tpu.dot_dimension_numbers<[1], [0], [0], [1], [0, 0, 1, 1], [], []>} : vector<14x64xbf16>, vector<64x32xbf16>, vector<14x32xf32> -> vector<14x32xf32>
    %c0_24 = arith.constant 0 : index
    %c0_25 = arith.constant 0 : index
    %77 = vector.load %arg8[%c0_24, %c0_25] : memref<1x32xf32, #tpu.memory_space<vmem>>, vector<1x32xf32>
    %78 = vector.broadcast %77 : vector<1x32xf32> to vector<14x32xf32>
    %79 = arith.addf %76, %78 : vector<14x32xf32>
    %cst_26 = arith.constant 0.000000e+00 : f32
    %80 = vector.broadcast %cst_26 : f32 to vector<14x32xf32>
    %81 = arith.maximumf %79, %80 : vector<14x32xf32>
    %82 = vector.extract_strided_slice %81 {offsets = [0, 0], sizes = [1, 32], strides = [1, 1]} : vector<14x32xf32> to vector<1x32xf32>
    %83 = vector.extract_strided_slice %81 {offsets = [1, 0], sizes = [1, 32], strides = [1, 1]} : vector<14x32xf32> to vector<1x32xf32>
    %84 = vector.extract_strided_slice %81 {offsets = [2, 0], sizes = [1, 32], strides = [1, 1]} : vector<14x32xf32> to vector<1x32xf32>
    %85 = vector.extract_strided_slice %81 {offsets = [3, 0], sizes = [1, 32], strides = [1, 1]} : vector<14x32xf32> to vector<1x32xf32>
    %86 = vector.extract_strided_slice %81 {offsets = [4, 0], sizes = [1, 32], strides = [1, 1]} : vector<14x32xf32> to vector<1x32xf32>
    %87 = vector.extract_strided_slice %81 {offsets = [5, 0], sizes = [1, 32], strides = [1, 1]} : vector<14x32xf32> to vector<1x32xf32>
    %88 = vector.extract_strided_slice %81 {offsets = [6, 0], sizes = [1, 32], strides = [1, 1]} : vector<14x32xf32> to vector<1x32xf32>
    %89 = tpu.concatenate %82, %83, %84, %85, %86, %87, %88 in 1 : vector<1x32xf32>, vector<1x32xf32>, vector<1x32xf32>, vector<1x32xf32>, vector<1x32xf32>, vector<1x32xf32>, vector<1x32xf32> -> vector<1x224xf32>
    %90 = vector.extract_strided_slice %81 {offsets = [7, 0], sizes = [1, 32], strides = [1, 1]} : vector<14x32xf32> to vector<1x32xf32>
    %91 = vector.extract_strided_slice %81 {offsets = [8, 0], sizes = [1, 32], strides = [1, 1]} : vector<14x32xf32> to vector<1x32xf32>
    %92 = vector.extract_strided_slice %81 {offsets = [9, 0], sizes = [1, 32], strides = [1, 1]} : vector<14x32xf32> to vector<1x32xf32>
    %93 = vector.extract_strided_slice %81 {offsets = [10, 0], sizes = [1, 32], strides = [1, 1]} : vector<14x32xf32> to vector<1x32xf32>
    %94 = vector.extract_strided_slice %81 {offsets = [11, 0], sizes = [1, 32], strides = [1, 1]} : vector<14x32xf32> to vector<1x32xf32>
    %95 = vector.extract_strided_slice %81 {offsets = [12, 0], sizes = [1, 32], strides = [1, 1]} : vector<14x32xf32> to vector<1x32xf32>
    %96 = vector.extract_strided_slice %81 {offsets = [13, 0], sizes = [1, 32], strides = [1, 1]} : vector<14x32xf32> to vector<1x32xf32>
    %97 = tpu.concatenate %90, %91, %92, %93, %94, %95, %96 in 1 : vector<1x32xf32>, vector<1x32xf32>, vector<1x32xf32>, vector<1x32xf32>, vector<1x32xf32>, vector<1x32xf32>, vector<1x32xf32> -> vector<1x224xf32>
    %98 = tpu.concatenate %89, %97 in 0 : vector<1x224xf32>, vector<1x224xf32> -> vector<2x224xf32>
    %99 = arith.truncf %98 : vector<2x224xf32> to vector<2x224xbf16>
    %c0_27 = arith.constant 0 : index
    %c0_28 = arith.constant 0 : index
    %100 = vector.load %arg9[%c0_27, %c0_28] : memref<224x128xbf16, #tpu.memory_space<vmem>>, vector<224x128xbf16>
    %cst_29 = arith.constant dense<0.000000e+00> : vector<2x128xf32>
    %101 = tpu.matmul %99, %100, %cst_29 {dimension_numbers = #tpu.dot_dimension_numbers<[1], [0], [0], [1], [0, 0, 1, 1], [], []>} : vector<2x224xbf16>, vector<224x128xbf16>, vector<2x128xf32> -> vector<2x128xf32>
    %c0_30 = arith.constant 0 : index
    %c0_31 = arith.constant 0 : index
    %102 = vector.load %arg10[%c0_30, %c0_31] : memref<1x128xf32, #tpu.memory_space<vmem>>, vector<1x128xf32>
    %103 = vector.broadcast %102 : vector<1x128xf32> to vector<2x128xf32>
    %104 = arith.addf %101, %103 : vector<2x128xf32>
    %cst_32 = arith.constant 0.000000e+00 : f32
    %105 = vector.broadcast %cst_32 : f32 to vector<2x128xf32>
    %106 = arith.maximumf %104, %105 : vector<2x128xf32>
    %107 = arith.truncf %106 : vector<2x128xf32> to vector<2x128xbf16>
    %c0_33 = arith.constant 0 : index
    %c0_34 = arith.constant 0 : index
    %108 = vector.load %arg11[%c0_33, %c0_34] : memref<128x16xbf16, #tpu.memory_space<vmem>>, vector<128x16xbf16>
    %cst_35 = arith.constant dense<0.000000e+00> : vector<2x16xf32>
    %109 = tpu.matmul %107, %108, %cst_35 {dimension_numbers = #tpu.dot_dimension_numbers<[1], [0], [0], [1], [0, 0, 1, 1], [], []>} : vector<2x128xbf16>, vector<128x16xbf16>, vector<2x16xf32> -> vector<2x16xf32>
    %c0_36 = arith.constant 0 : index
    %c0_37 = arith.constant 0 : index
    %110 = vector.load %arg12[%c0_36, %c0_37] : memref<1x16xf32, #tpu.memory_space<vmem>>, vector<1x16xf32>
    %111 = vector.broadcast %110 : vector<1x16xf32> to vector<2x16xf32>
    %112 = arith.addf %109, %111 : vector<2x16xf32>
    %113 = vector.extract_strided_slice %112 {offsets = [0, 0], sizes = [2, 8], strides = [1, 1]} : vector<2x16xf32> to vector<2x8xf32>
    %114 = vector.extract_strided_slice %112 {offsets = [0, 8], sizes = [2, 8], strides = [1, 1]} : vector<2x16xf32> to vector<2x8xf32>
    %115 = math.exp %114 : vector<2x8xf32>
    %c0_38 = arith.constant 0 : index
    %c0_39 = arith.constant 0 : index
    %116 = vector.load %arg13[%c0_38, %c0_39] : memref<2x8xf32, #tpu.memory_space<vmem>>, vector<2x8xf32>
    %117 = arith.mulf %115, %116 : vector<2x8xf32>
    %118 = arith.addf %113, %117 : vector<2x8xf32>
    %c0_40 = arith.constant 0 : index
    %c0_41 = arith.constant 0 : index
    %119 = vector.load %arg14[%c0_40, %c0_41] : memref<2x8xf32, #tpu.memory_space<vmem>>, vector<2x8xf32>
    tpu.vector_store %arg14[%c0_40, %c0_41], %118 {strides = array<i32>} : memref<2x8xf32, #tpu.memory_space<vmem>>, vector<2x8xf32>,
    %cst_42 = arith.constant 5.000000e-01 : f32
    %120 = vector.broadcast %cst_42 : f32 to vector<2x8xf32>
    %121 = arith.mulf %120, %115 : vector<2x8xf32>
    %cst_43 = arith.constant 5.000000e-01 : f32
    %122 = vector.broadcast %cst_43 : f32 to vector<2x8xf32>
    %123 = arith.mulf %122, %113 : vector<2x8xf32>
    %124 = arith.mulf %123, %113 : vector<2x8xf32>
    %125 = arith.addf %121, %124 : vector<2x8xf32>
    %cst_44 = arith.constant 5.000000e-01 : f32
    %126 = vector.broadcast %cst_44 : f32 to vector<2x8xf32>
    %127 = arith.mulf %126, %114 : vector<2x8xf32>
    %128 = arith.subf %125, %127 : vector<2x8xf32>
    %cst_45 = arith.constant 5.000000e-01 : f32
    %129 = vector.broadcast %cst_45 : f32 to vector<2x8xf32>
    %130 = arith.subf %128, %129 : vector<2x8xf32>
    %cst_46 = arith.constant dense<0.000000e+00> : vector<2xf32>
    %131 = vector.multi_reduction <add>, %130, %cst_46 [1] : vector<2x8xf32> to vector<2xf32>
    %132 = vector.shape_cast %131 : vector<2xf32> to vector<2x1xf32>
    %cst_47 = arith.constant dense<0.000000e+00> : vector<1xf32>
    %133 = vector.multi_reduction <add>, %132, %cst_47 [0] : vector<2x1xf32> to vector<1xf32>
    %134 = vector.shape_cast %133 : vector<1xf32> to vector<1x1xf32>
    %c0_48 = arith.constant 0 : index
    %c0_49 = arith.constant 0 : index
    %135 = vector.load %arg15[%c0_48, %c0_49] : memref<1x1xf32, #tpu.memory_space<vmem>>, vector<1x1xf32>
    tpu.vector_store %arg15[%c0_48, %c0_49], %134 {strides = array<i32>} : memref<1x1xf32, #tpu.memory_space<vmem>>, vector<1x1xf32>,
    return
  }
}

</mosaic_0001>

<bundles_post_ra>
// kernel: tpu_custom_call.1
= control target key start
LH: loop header
LB: loop body
LE: loop exit
PB: predicated region body
PF: predicated region fallthrough
CT: control target
= control target key end

     0   :  { %21 = vsyncpa [#allocation3], 0  ;;  %vm58_vm0 = vcmask 1046528   ;;  %vm68_vm1 = vcmask 1045504   ;;  %vm78_vm2 = vcmask 1044480   ;;  %s1334_s29 = smov 16   ;;  %s1733_s0 = inlined_call_operand.vmem [shape: f32[32,16], index: 0, kind: input, shape index: {}]   ;;  %s1734_s1 = inlined_call_operand.vmem [shape: bf16[64,8], index: 1, kind: input, shape index: {}]   ;;  %s1735_s2 = inlined_call_operand.vmem [shape: f32[1,8], index: 2, kind: input, shape index: {}]   ;;  %s1736_s3 = inlined_call_operand.vmem [shape: bf16[32,16], index: 3, kind: input, shape index: {}]   ;;  %s1737_s4 = inlined_call_operand.vmem [shape: f32[1,16], index: 4, kind: input, shape index: {}]   ;;  %s1738_s5 = inlined_call_operand.vmem [shape: f32[1,16], index: 5, kind: input, shape index: {}]   ;;  %s1739_s6 = inlined_call_operand.vmem [shape: f32[1,16], index: 6, kind: input, shape index: {}]   ;;  %s1740_s7 = inlined_call_operand.vmem [shape: bf16[64,32], index: 7, kind: input, shape index: {}]   ;;  %s1741_s8 = inlined_call_operand.vmem [shape: f32[1,32], index: 8, kind: input, shape index: {}]   ;;  %s1742_s9 = inlined_call_operand.vmem [shape: bf16[224,128], index: 9, kind: input, shape index: {}]   ;;  %s1743_s10 = inlined_call_operand.vmem [shape: f32[1,128], index: 10, kind: input, shape index: {}]   ;;  %s1744_s11 = inlined_call_operand.vmem [shape: bf16[128,16], index: 11, kind: input, shape index: {}]   ;;  %s1745_s12 = inlined_call_operand.vmem [shape: f32[1,16], index: 12, kind: input, shape index: {}]   ;;  %s1746_s13 = inlined_call_operand.vmem [shape: f32[2,8], index: 13, kind: input, shape index: {}]   ;;  %s1747_s14 = inlined_call_operand.hbm [shape: f32[2,8], index: 14, kind: output, shape index: {0}]   ;;  %s1748_s15 = inlined_call_operand.hbm [shape: f32[1,1], index: 15, kind: output, shape index: {1}]  }
   0x1   :  { %v1430_v0 = vld [vmem:[%s1733_s0 + $0x10] sm:$0xff]  ;;  %v1435_v1 = vld [vmem:[%s1733_s0 + $0x18] sm:$0xff]  ;;  %v1440_v2 = vld [vmem:[%s1733_s0] sm:$0xff]  ;;  %s1335_s19 = smov 32   ;;  %s1336_s20 = smov 48  }
   0x2   :  { %v99_v3 = vrot.slane %v1430_v0, 1  ;;  %v100_v4 = vrot.slane %v1435_v1, 1  ;;  %v1447_v5 = vld [vmem:[%s1733_s0 + $0x8] sm:$0xff]  ;;  %v59_v6 = vrot.slane %v1440_v2, 1  ;;  %v108_v7 = vrot.slane %v1430_v0, 2  ;;  %v1250_v11 = vld [vmem:[%s1734_s1] sm:$0xff]  }
   0x3   :  { %v60_v8 = vrot.slane %v1447_v5, 1  ;;  %v109_v9 = vrot.slane %v1435_v1, 2  ;;  %v117_v10 = vrot.slane %v1430_v0, 3  ;;  %v118_v13 = vrot.slane %v1435_v1, 3  ;;  %v1251_v16 = vld [vmem:[%s1734_s1 + $0x8] sm:$0xff]   ;;  %1090 = vmatprep.subr.bf16.mxu0 %v1250_v11  ;;  %v1252_v25 = vld [vmem:[%s1734_s1 + $0x10] sm:$0xff]  }
   0x4   :  { %v101_v12 = vsel %vm58_vm0, %v99_v3, %v100_v4  ;;  %v69_v14 = vrot.slane %v1440_v2, 2  ;;  %v70_v15 = vrot.slane %v1447_v5, 2  ;;  %v79_v20 = vrot.slane %v1440_v2, 3  ;;  %1091 = vmatpush3.bf16.msra.mxu0 %v1250_v11  ;;  %v1253_v29 = vld [vmem:[%s1734_s1 + $0x18] sm:$0xff]  }
   0x5   :  { %v1155_v17 = vpack.i.bf16 %v100_v4, %v101_v12  ;;  %v61_v18 = vsel %vm58_vm0, %v59_v6, %v60_v8  ;;  %v110_v19 = vsel %vm68_vm1, %v108_v7, %v109_v9  ;;  %v119_v22 = vsel %vm78_vm2, %v117_v10, %v118_v13  ;;  %1092 = vmatprep.subr.bf16.mxu0 %v1251_v16 }
   0x6   :  { %v1165_v21 = vpack.i.bf16 %v61_v18, %v60_v8  ;;  %v1160_v23 = vpack.i.bf16 %v109_v9, %v110_v19  ;;  %v80_v24 = vrot.slane %v1447_v5, 3  ;;  %v1170_v26 = vpack.i.bf16 %v118_v13, %v119_v22 }
   0x7   :  { %1156 = vrot.lane.b32.xlu0 %v1155_v17, %s1334_s29  ;;  %v71_v27 = vsel %vm68_vm1, %v69_v14, %v70_v15 }
   0x8   :  { %1166 = vrot.lane.b32.xlu1 %v1165_v21, %s1334_s29  ;;  %v81_v28 = vsel %vm78_vm2, %v79_v20, %v80_v24  ;;  %1093 = vmatpush3.bf16.msra.mxu0 %v1251_v16  ;;  %v1175_v30 = vpack.i.bf16 %v71_v27, %v70_v15 }
   0x9   :  { %1094 = vmatprep.subr.bf16.mxu0 %v1252_v25  ;;  %v1180_v31 = vpack.i.bf16 %v81_v28, %v80_v24 }
   0xb   :  { %1161 = vrot.lane.b32.xlu0 %v1160_v23, %s1335_s19 }
   0xc   :  { %1171 = vrot.lane.b32.xlu1 %v1170_v26, %s1336_s20  ;;  %1095 = vmatpush3.bf16.msra.mxu0 %v1252_v25 }
   0xd   :  { %1096 = vmatprep.subr.bf16.mxu0 %v1253_v29 }
   0xf   :  { %1176 = vrot.lane.b32.xlu0 %v1175_v30, %s1335_s19 }
  0x10   :  { %1181 = vrot.lane.b32.xlu1 %v1180_v31, %s1336_s20  ;;  %1097 = vmatpush3.bf16.msra.mxu0 %v1253_v29 }
  0x11   :  { %22 = vsyncpa [#allocation5], 0  ;;  %vm88_vm3 = vcmask 130048   ;;  %vm91_vm4 = vcmask 261120   ;;  %vm94_vm5 = vcmask 392192   ;;  %vm182_vm6 = vcmask 523264  }
  0x12   :  { %v1020_v4 = vld [vmem:[%s1735_s2] ss:$0 sm:$0xff]  ;;  %v1255_v27 = vld [vmem:[%s1736_s3 + $0x8] sm:$0xff]   ;;  %s1337_s25 = smov 24   ;;  %vm271_vm7 = vcmask 64512   ;;  %vm276_vm8 = vcmask 195584  }
  0x13   :  { %v1254_v21 = vld [vmem:[%s1736_s3] sm:$0xff]   ;;  %s1338_s3 = smov 8   ;;  %vm321_vm9 = vcmask 1041408   ;;  %vm405_vm10 = vcmask 125952   ;;  %vm1340_vm11 = vmmov 0   ;;  %s1342_s27 = smov 64  }
  0x14   :  { %1102 = vmatprep.subr.bf16.mxu1 %v1254_v21  ;;  %s1343_s30 = smov 96   ;;  %vm633_vm12 = vcmask 785408   ;;  %vm671_vm13 = vcmask 1040384   ;;  %vm964_vm14 = vcmask 58368  }
  0x15   :  { %1103 = vmatpush3.bf16.msra.mxu1 %v1254_v21 }
  0x16   :  { %1104 = vmatprep.subr.bf16.mxu1 %v1255_v27 }
  0x19   :  { %1105 = vmatpush3.bf16.msra.mxu1 %v1255_v27 }
  0x79   :  { %v1157_v32 = vpop.permute.xlu0 %1156 }
  0x7a   :  { %v1167_v33 = vpop.permute.xlu1 %1166  ;;  %v1159_v34 = vunpack.i.h.bf16 %v1157_v32  ;;  %v1158_v35 = vunpack.i.l.bf16 %v1157_v32 }
  0x7b   :  { %v1169_v37 = vunpack.i.h.bf16 %v1167_v33  ;;  %v1168_v38 = vunpack.i.l.bf16 %v1167_v33 }
  0x7c   :  { %v127_v42 = vsel %vm88_vm3, %v1435_v1, %v1159_v34  ;;  %v126_v43 = vsel %vm88_vm3, %v1430_v0, %v1158_v35 }
  0x7d   :  { %v1162_v36 = vpop.permute.xlu0 %1161  ;;  %v89_v56 = vsel %vm88_vm3, %v1440_v2, %v1169_v37  ;;  %v90_v57 = vsel %vm88_vm3, %v1447_v5, %v1168_v38 }
  0x7e   :  { %v1164_v39 = vunpack.i.h.bf16 %v1162_v36  ;;  %v1163_v40 = vunpack.i.l.bf16 %v1162_v36  ;;  %v1172_v41 = vpop.permute.xlu1 %1171 }
  0x7f   :  { %v1174_v44 = vunpack.i.h.bf16 %v1172_v41  ;;  %v1173_v45 = vunpack.i.l.bf16 %v1172_v41 }
  0x80   :  { %v128_v46 = vsel %vm91_vm4, %v126_v43, %v1163_v40  ;;  %v129_v47 = vsel %vm91_vm4, %v127_v42, %v1164_v39 }
  0x81   :  { %v131_v48 = vsel %vm94_vm5, %v129_v47, %v1174_v44  ;;  %v130_v49 = vsel %vm94_vm5, %v128_v46, %v1173_v45  ;;  %v1177_v50 = vpop.permute.xlu0 %1176 }
  0x82   :  { %v135_v51 = vrot.slane %v131_v48, 3  ;;  %v134_v52 = vrot.slane %v130_v49, 3  ;;  %v1179_v53 = vunpack.i.h.bf16 %v1177_v50  ;;  %v1178_v54 = vunpack.i.l.bf16 %v1177_v50  ;;  %v1182_v55 = vpop.permute.xlu1 %1181 }
  0x83   :  { %v1184_v58 = vunpack.i.h.bf16 %v1182_v55  ;;  %v1183_v59 = vunpack.i.l.bf16 %v1182_v55 }
  0x84   :  { %v93_v60 = vsel %vm91_vm4, %v90_v57, %v1178_v54  ;;  %v92_v61 = vsel %vm91_vm4, %v89_v56, %v1179_v53  ;;  %v136_v0 = vsel %vm78_vm2, %v134_v52, %v135_v51 }
  0x85   :  { %v95_v62 = vsel %vm94_vm5, %v92_v61, %v1184_v58  ;;  %v96_v63 = vsel %vm94_vm5, %v93_v60, %v1183_v59  ;;  %v142_v2 = vpack.c.bf16 %v135_v51, %v136_v0 }
  0x86   :  { %v140_v1 = vsel %vm78_vm2, %v96_v63, %v134_v52 }
  0x87   :  { %v141_v3 = vpack.c.bf16 %v140_v1, %v95_v62 }
  0x89   :  { %1098 = vmatprep.mubr.msk.bf16.mxu0 %vm182_vm6, %v141_v3 }
  0x8a   :  { %1099 = vmatmul.mubr.msk.bf16.vlgmr.msra.gmra.mrb[0].mxu0 %vm182_vm6, %v142_v2 }
 0x15d   :  { %v1100_v5 = vpop.f32.mrb[0].mxu0 }
 0x15e   :  { %v232_v6 = vadd.f32 %v1100_v5, %v1020_v4  ;;  %v223_v7 = vpop.f32.mrb[1].mxu0 }
 0x15f   :  { %v224_v8 = vadd.f32 %v1020_v4, %v223_v7  ;;  %v1101_v9 = vpop.f32.mrb[2].mxu0 }
 0x160   :  { %v240_v10 = vmax.f32 %v232_v6, 0.0  ;;  %v235_v11 = vadd.f32 %v1101_v9, %v1020_v4  ;;  %v226_v12 = vpop.f32.mrb[3].mxu0 }
 0x161   :  { %v227_v13 = vadd.f32 %v1020_v4, %v226_v12  ;;  %v238_v15 = vmax.f32 %v224_v8, 0.0 }
 0x162   :  { %v241_v14 = vmax.f32 %v235_v11, 0.0  ;;  %v289_v17 = vrot.slane %v240_v10, 2  ;;  %v299_v20 = vrot.slane %v240_v10, 3  ;;  %v280_v26 = vrot.slane %v240_v10, 1 }
 0x163   :  { %v239_v16 = vmax.f32 %v227_v13, 0.0  ;;  %v244_v28 = vrot.slane %v238_v15, 1  ;;  %v253_v35 = vrot.slane %v238_v15, 2  ;;  %v262_v36 = vrot.slane %v238_v15, 3 }
 0x164   :  { %v291_v18 = vrot.slane %v241_v14, 2  ;;  %v300_v19 = vrot.slane %v241_v14, 3 }
 0x165   :  { %v254_v22 = vrot.slane %v239_v16, 2  ;;  %v245_v23 = vrot.slane %v239_v16, 1  ;;  %v263_v34 = vrot.slane %v239_v16, 3 }
 0x166   :  { %v301_v24 = vsel %vm78_vm2, %v299_v20, %v300_v19  ;;  %v292_v25 = vsel %vm68_vm1, %v289_v17, %v291_v18 }
 0x167   :  { %v1185_v29 = vpack.i.bf16 %v301_v24, %v299_v20  ;;  %v290_v30 = vsel %vm68_vm1, %v254_v22, %v289_v17  ;;  %v281_v32 = vsel %vm58_vm0, %v245_v23, %v280_v26  ;;  %v246_v33 = vsel %vm58_vm0, %v244_v28, %v245_v23 }
 0x168   :  { %v1195_v31 = vpack.i.bf16 %v292_v25, %v290_v30  ;;  %v1190_v37 = vpack.i.bf16 %v280_v26, %v281_v32  ;;  %v1200_v38 = vpack.i.bf16 %v246_v33, %v245_v23  ;;  %v255_v39 = vsel %vm68_vm1, %v253_v35, %v254_v22 }
 0x169   :  { %1186 = vrot.lane.b32.xlu0 %v1185_v29, %s1337_s25  ;;  %v264_v40 = vsel %vm78_vm2, %v262_v36, %v263_v34  ;;  %v1205_v41 = vpack.i.bf16 %v255_v39, %v254_v22 }
 0x16a   :  { %1196 = vrot.lane.b32.xlu1 %v1195_v31, %s1334_s29  ;;  %v1210_v42 = vpack.i.bf16 %v264_v40, %v263_v34 }
 0x16d   :  { %1191 = vrot.lane.b32.xlu0 %v1190_v37, %s1338_s3 }
 0x16e   :  { %1201 = vrot.lane.b32.xlu1 %v1200_v38, %s1338_s3 }
 0x171   :  { %1206 = vrot.lane.b32.xlu0 %v1205_v41, %s1334_s29 }
 0x172   :  { %1211 = vrot.lane.b32.xlu1 %v1210_v42, %s1337_s25 }
 0x1db   :  { %v1187_v43 = vpop.permute.xlu0 %1186 }
 0x1dc   :  { %v1197_v44 = vpop.permute.xlu1 %1196  ;;  %v1189_v53 = vunpack.i.h.bf16 %v1187_v43  ;;  %v1188_v54 = vunpack.i.l.bf16 %v1187_v43 }
 0x1dd   :  { %v1199_v49 = vunpack.i.h.bf16 %v1197_v44  ;;  %v1198_v50 = vunpack.i.l.bf16 %v1197_v44 }
 0x1df   :  { %v1192_v45 = vpop.permute.xlu0 %1191 }
 0x1e0   :  { %v1194_v46 = vunpack.i.h.bf16 %v1192_v45  ;;  %v1193_v47 = vunpack.i.l.bf16 %v1192_v45  ;;  %v1202_v48 = vpop.permute.xlu1 %1201 }
 0x1e1   :  { %v1204_v51 = vunpack.i.h.bf16 %v1202_v48  ;;  %v1203_v52 = vunpack.i.l.bf16 %v1202_v48 }
 0x1e2   :  { %v309_v55 = vsel %vm271_vm7, %v240_v10, %v1194_v46  ;;  %v308_v56 = vsel %vm271_vm7, %v239_v16, %v1193_v47 }
 0x1e3   :  { %v311_v57 = vsel %vm88_vm3, %v309_v55, %v1199_v49  ;;  %v310_v58 = vsel %vm88_vm3, %v308_v56, %v1198_v50  ;;  %v272_v59 = vsel %vm271_vm7, %v238_v15, %v1204_v51  ;;  %v273_v60 = vsel %vm271_vm7, %v239_v16, %v1203_v52  ;;  %v1207_v61 = vpop.permute.xlu0 %1206  ;;  %v1027_v16 = vld [vmem:[%s1737_s4] ss:$0 sm:$0xff] }
 0x1e4   :  { %v1209_v62 = vunpack.i.h.bf16 %v1207_v61  ;;  %v1208_v63 = vunpack.i.l.bf16 %v1207_v61  ;;  %v1212_v0 = vpop.permute.xlu1 %1211  ;;  %v312_v1 = vsel %vm276_vm8, %v310_v58, %v1188_v54  ;;  %v313_v3 = vsel %vm276_vm8, %v311_v57, %v1189_v53  ;;  %v1256_v55 = vld [vmem:[%s1740_s7] sm:$0xff]  }
 0x1e5   :  { %v1214_v2 = vunpack.i.h.bf16 %v1212_v0  ;;  %v1213_v4 = vunpack.i.l.bf16 %v1212_v0  ;;  %v316_v5 = vrot.slane %v312_v1, 3  ;;  %v317_v6 = vrot.slane %v313_v3, 3  ;;  %v1032_v57 = vld [vmem:[%s1738_s5] ss:$0 sm:$0xff] }
 0x1e6   :  { %v275_v7 = vsel %vm88_vm3, %v273_v60, %v1208_v63  ;;  %v274_v8 = vsel %vm88_vm3, %v272_v59, %v1209_v62  ;;  %v1339_v15 = vmov 0.0   ;;  %v1033_v61 = vld [vmem:[%s1739_s6] ss:$0 sm:$0xff]  ;;  %v1257_v62 = vld [vmem:[%s1740_s7 + $0x8] sm:$0xff]  }
 0x1e7   :  { %v277_v9 = vsel %vm276_vm8, %v274_v8, %v1214_v2  ;;  %v278_v10 = vsel %vm276_vm8, %v275_v7, %v1213_v4  ;;  %v318_v11 = vsel %vm78_vm2, %v316_v5, %v317_v6  ;;  %v324_v14 = vpack.c.bf16 %v317_v6, %v317_v6  ;;  %1110 = vmatprep.subr.bf16.mxu1 %v1339_v15  ;;  %v1258_v5 = vld [vmem:[%s1740_s7 + $0x10] sm:$0xff]  }
 0x1e8   :  { %v322_v12 = vsel %vm321_vm9, %v278_v10, %v318_v11 }
 0x1e9   :  { %v323_v13 = vpack.c.bf16 %v322_v12, %v277_v9 }
 0x1eb   :  { %1106 = vmatprep.mubr.msk.bf16.mxu1 %vm91_vm4, %v323_v13 }
 0x1ec   :  { %1107 = vmatmul.mubr.msk.bf16.vlgmr.msra.gmra.mrb[0].mxu1 %vm91_vm4, %v324_v14 }
 0x1ed   :  { %1111 = vmatpush3.bf16.msra.mxu1 %v1256_v55  ;;  %1118 = vmatprep.mubr.msk.bf16.mxu1 %vm1340_vm11, %v1339_v15  ;;  %v1341_v55 = vmov 0  }
 0x1ee   :  { %1112 = vmatprep.subr.bf16.mxu1 %v1339_v15  ;;  %798 = vmatprep.subr.bf16.mxu0 %v1341_v55 }
 0x1f1   :  { %1113 = vmatpush3.bf16.msra.mxu1 %v1257_v62  ;;  %v1267_v62 = vld [vmem:[%s1742_s9 + $0x38] sm:$0xff]  }
 0x1f2   :  { %1114 = vmatprep.subr.bf16.mxu1 %v1339_v15 }
 0x1f5   :  { %1115 = vmatpush3.bf16.msra.mxu1 %v1258_v5 }
 0x1f6   :  { %1116 = vmatprep.subr.bf16.mxu1 %v1339_v15 }
 0x2bf   :  { %v1108_v17 = vpop.f32.mrb[0].mxu1 }
 0x2c0   :  { %v388_v18 = vpop.f32.mrb[1].mxu1  ;;  %v397_v22 = vadd.f32 %v1108_v17, %v1027_v16  ;;  %v1259_v17 = vld [vmem:[%s1740_s7 + $0x18] sm:$0xff]  }
 0x2c1   :  { %v389_v19 = vadd.f32 %v1027_v16, %v388_v18  ;;  %v1109_v20 = vpop.f32.mrb[2].mxu1  ;;  %1117 = vmatpush3.bf16.msra.mxu1 %v1259_v17 }
 0x2c2   :  { %v391_v21 = vpop.f32.mrb[3].mxu1  ;;  %v406_v27 = vsel %vm405_vm10, %v397_v22, 0.0  ;;  %1122 = vmatprep.subr.bf16.mxu1 %v1339_v15 }
 0x2c3   :  { %v392_v23 = vadd.f32 %v1027_v16, %v391_v21  ;;  %v402_v24 = vsel %vm88_vm3, %v389_v19, 0.0 }
 0x2c5   :  { %v403_v25 = vsel %vm88_vm3, %v392_v23, 0.0 }
 0x2c6   :  { %v404_v26 = vadd.f32 %v403_v25, %v402_v24 }
 0x2c8   :  { %v407_v28 = vadd.f32 %v406_v27, %v404_v26 }
 0x2ca   :  { %v408_v29 = vrot.slane %v407_v28, 4 }
 0x2cc   :  { %v409_v30 = vadd.f32 %v408_v29, %v407_v28 }
 0x2ce   :  { %v410_v31 = vrot.slane %v409_v30, 2 }
 0x2d0   :  { %v411_v32 = vadd.f32 %v410_v31, %v409_v30 }
 0x2d2   :  { %v412_v33 = vrot.slane %v411_v32, 1 }
 0x2d4   :  { %v413_v34 = vadd.f32 %v412_v33, %v411_v32 }
 0x2d6   :  { %v414_v35 = vmul.f32 0.05, %v413_v34 }
 0x2d8   :  { %v415_v36 = vsub.f32 %v389_v19, %v414_v35  ;;  %v416_v37 = vsub.f32 %v392_v23, %v414_v35  ;;  %v417_v38 = vsub.f32 %v397_v22, %v414_v35 }
 0x2da   :  { %v418_v39 = vmul.f32 %v415_v36, %v415_v36  ;;  %v419_v40 = vmul.f32 %v416_v37, %v416_v37  ;;  %v420_v41 = vmul.f32 %v417_v38, %v417_v38 }
 0x2dc   :  { %v421_v42 = vsel %vm88_vm3, %v418_v39, 0.0  ;;  %v422_v43 = vsel %vm88_vm3, %v419_v40, 0.0  ;;  %v424_v45 = vsel %vm405_vm10, %v420_v41, 0.0 }
 0x2dd   :  { %v423_v44 = vadd.f32 %v422_v43, %v421_v42 }
 0x2df   :  { %v425_v46 = vadd.f32 %v424_v45, %v423_v44 }
 0x2e1   :  { %v426_v47 = vrot.slane %v425_v46, 4 }
 0x2e3   :  { %v427_v48 = vadd.f32 %v426_v47, %v425_v46 }
 0x2e5   :  { %v428_v49 = vrot.slane %v427_v48, 2 }
 0x2e7   :  { %v429_v50 = vadd.f32 %v428_v49, %v427_v48 }
 0x2e9   :  { %v430_v51 = vrot.slane %v429_v50, 1 }
 0x2eb   :  { %v431_v52 = vadd.f32 %v430_v51, %v429_v50 }
 0x2ed   :  { %v432_v53 = vmul.f32 0.05, %v431_v52 }
 0x2ef   :  { %v433_v54 = vadd.f32 1e-05, %v432_v53 }
 0x2f1   :  { %1282 = vrsqrt.f32 %v433_v54  ;;  %v1260_v54 = vld [vmem:[%s1742_s9] sm:$0xff]  }
 0x2f2   :  { %799 = vmatpush1.bf16.msra.mxu0 %v1260_v54 }
 0x2f3   :  { %800 = vmatprep.subr.bf16.mxu0 %v1341_v55 }
 0x2fb   :  { %v1283_v56 = vpop.eup %1282 }
 0x2fc   :  { %v435_v58 = vmul.f32 %v1283_v56, %v415_v36  ;;  %v436_v59 = vmul.f32 %v1283_v56, %v416_v37  ;;  %v437_v60 = vmul.f32 %v1283_v56, %v417_v38  ;;  %v1261_v56 = vld [vmem:[%s1742_s9 + $0x8] sm:$0xff]  }
 0x2fd   :  { %801 = vmatpush1.bf16.msra.mxu0 %v1261_v56 }
 0x2fe   :  { %v445_v63 = vmul.f32 %v1032_v57, %v435_v58  ;;  %v446_v0 = vmul.f32 %v1032_v57, %v436_v59  ;;  %v447_v1 = vmul.f32 %v1032_v57, %v437_v60  ;;  %v1262_v57 = vld [vmem:[%s1742_s9 + $0x10] sm:$0xff]   ;;  %802 = vmatprep.subr.bf16.mxu0 %v1341_v55  ;;  %v1263_v58 = vld [vmem:[%s1742_s9 + $0x18] sm:$0xff]   ;;  %v1264_v59 = vld [vmem:[%s1742_s9 + $0x20] sm:$0xff]  }
 0x2ff   :  { %v1265_v60 = vld [vmem:[%s1742_s9 + $0x28] sm:$0xff]  }
 0x300   :  { %v456_v3 = vadd.f32 %v1033_v61, %v446_v0  ;;  %v457_v2 = vadd.f32 %v1033_v61, %v447_v1  ;;  %v455_v4 = vadd.f32 %v1033_v61, %v445_v63  ;;  %v1266_v61 = vld [vmem:[%s1742_s9 + $0x30] sm:$0xff]   ;;  %v1268_v63 = vld [vmem:[%s1742_s9 + $0x40] sm:$0xff]   ;;  %v1269_v0 = vld [vmem:[%s1742_s9 + $0x48] sm:$0xff]  }
 0x301   :  { %803 = vmatpush1.bf16.msra.mxu0 %v1262_v57  ;;  %v1270_v1 = vld [vmem:[%s1742_s9 + $0x50] sm:$0xff]  }
 0x302   :  { %v459_v6 = vmax.f32 %v456_v3, 0.0  ;;  %v460_v7 = vmax.f32 %v457_v2, 0.0  ;;  %v458_v8 = vmax.f32 %v455_v4, 0.0  ;;  %804 = vmatprep.subr.bf16.mxu0 %v1341_v55  ;;  %v1034_v3 = vld [vmem:[%s1741_s8] ss:$0 sm:$0xff]  ;;  %v1271_v4 = vld [vmem:[%s1742_s9 + $0x58] sm:$0xff]  }
 0x304   :  { %v462_v9 = vrot.slane %v458_v8, 1  ;;  %v468_v10 = vrot.slane %v459_v6, 2  ;;  %v492_v11 = vrot.slane %v460_v7, 2  ;;  %v483_v12 = vrot.slane %v459_v6, 1 }
 0x305   :  { %v484_v13 = vrot.slane %v460_v7, 1  ;;  %v474_v14 = vrot.slane %v459_v6, 3  ;;  %v500_v16 = vrot.slane %v460_v7, 3  ;;  %v467_v23 = vrot.slane %v458_v8, 2  ;;  %805 = vmatpush1.bf16.msra.mxu0 %v1263_v58 }
 0x306   :  { %463 = vrot.lane.b32.xlu0 %v462_v9, %s1334_s29  ;;  %v493_v18 = vsel %vm68_vm1, %v468_v10, %v492_v11  ;;  %v473_v25 = vrot.slane %v458_v8, 3  ;;  %806 = vmatprep.subr.bf16.mxu0 %v1341_v55 }
 0x307   :  { %v1220_v19 = vpack.i.bf16 %v492_v11, %v493_v18  ;;  %v485_v20 = vsel %vm58_vm0, %v483_v12, %v484_v13  ;;  %v501_v22 = vsel %vm78_vm2, %v474_v14, %v500_v16  ;;  %v469_v26 = vsel %vm68_vm1, %v467_v23, %v468_v10  ;;  %v1272_v11 = vld [vmem:[%s1742_s9 + $0x60] sm:$0xff]  }
 0x308   :  { %v1215_v21 = vpack.i.bf16 %v484_v13, %v485_v20  ;;  %v1225_v24 = vpack.i.bf16 %v500_v16, %v501_v22  ;;  %v475_v27 = vsel %vm78_vm2, %v473_v25, %v474_v14 }
 0x309   :  { %1221 = vrot.lane.b32.xlu1 %v1220_v19, %s1335_s19  ;;  %807 = vmatpush1.bf16.msra.mxu0 %v1264_v59 }
 0x30a   :  { %1216 = vrot.lane.b32.xlu0 %v1215_v21, %s1334_s29  ;;  %808 = vmatprep.subr.bf16.mxu0 %v1341_v55  ;;  %v1273_v21 = vld [vmem:[%s1742_s9 + $0x68] sm:$0xff]  }
 0x30d   :  { %1226 = vrot.lane.b32.xlu1 %v1225_v24, %s1336_s20  ;;  %809 = vmatpush1.bf16.msra.mxu0 %v1265_v60 }
 0x30e   :  { %470 = vrot.lane.b32.xlu0 %v469_v26, %s1335_s19  ;;  %810 = vmatprep.subr.bf16.mxu0 %v1341_v55  ;;  %v1274_v26 = vld [vmem:[%s1744_s11] sm:$0xff]  }
 0x311   :  { %476 = vrot.lane.b32.xlu1 %v475_v27, %s1336_s20  ;;  %811 = vmatpush1.bf16.msra.mxu0 %v1266_v61 }
 0x312   :  { %812 = vmatprep.subr.bf16.mxu0 %v1341_v55 }
 0x315   :  { %813 = vmatpush1.bf16.msra.mxu0 %v1267_v62 }
 0x316   :  { %814 = vmatprep.subr.bf16.mxu0 %v1341_v55 }
 0x319   :  { %815 = vmatpush1.bf16.msra.mxu0 %v1268_v63 }
 0x31a   :  { %816 = vmatprep.subr.bf16.mxu0 %v1341_v55 }
 0x31d   :  { %817 = vmatpush1.bf16.msra.mxu0 %v1269_v0 }
 0x31e   :  { %818 = vmatprep.subr.bf16.mxu0 %v1341_v55 }
 0x321   :  { %819 = vmatpush1.bf16.msra.mxu0 %v1270_v1 }
 0x322   :  { %820 = vmatprep.subr.bf16.mxu0 %v1341_v55 }
 0x325   :  { %821 = vmatpush1.bf16.msra.mxu0 %v1271_v4  ;;  %v1281_v4 = vld [vmem:[%s1744_s11 + $0x38] sm:$0xff]  }
 0x326   :  { %822 = vmatprep.subr.bf16.mxu0 %v1341_v55 }
 0x329   :  { %823 = vmatpush1.bf16.msra.mxu0 %v1272_v11 }
 0x32a   :  { %824 = vmatprep.subr.bf16.mxu0 %v1341_v55 }
 0x32d   :  { %825 = vmatpush1.bf16.msra.mxu0 %v1273_v21  ;;  %v953_v21 = vld [vmem:[%s1746_s13] sm:$0x3]  ;;  %s1345_s13 = smov [#allocation2]  }
 0x378   :  { %v464_v28 = vpop.permute.xlu0 %463 }
 0x379   :  { %v479_v43 = vsel %vm88_vm3, %v458_v8, %v464_v28  ;;  %v1275_v28 = vld [vmem:[%s1744_s11 + $0x8] sm:$0xff]  }
 0x37b   :  { %v1222_v29 = vpop.permute.xlu1 %1221 }
 0x37c   :  { %v1217_v30 = vpop.permute.xlu0 %1216  ;;  %v1224_v33 = vunpack.i.h.bf16 %v1222_v29  ;;  %v1223_v34 = vunpack.i.l.bf16 %v1222_v29 }
 0x37d   :  { %v1219_v31 = vunpack.i.h.bf16 %v1217_v30  ;;  %v1218_v32 = vunpack.i.l.bf16 %v1217_v30 }
 0x37f   :  { %v509_v35 = vsel %vm88_vm3, %v460_v7, %v1219_v31  ;;  %v508_v36 = vsel %vm88_vm3, %v459_v6, %v1218_v32  ;;  %v1227_v37 = vpop.permute.xlu1 %1226  ;;  %v1276_v31 = vld [vmem:[%s1744_s11 + $0x10] sm:$0xff]   ;;  %v1277_v32 = vld [vmem:[%s1744_s11 + $0x18] sm:$0xff]  }
 0x380   :  { %v1229_v38 = vunpack.i.h.bf16 %v1227_v37  ;;  %v1228_v39 = vunpack.i.l.bf16 %v1227_v37  ;;  %v510_v40 = vsel %vm91_vm4, %v508_v36, %v1223_v34  ;;  %v511_v41 = vsel %vm91_vm4, %v509_v35, %v1224_v33  ;;  %v471_v42 = vpop.permute.xlu0 %470  ;;  %v1278_v33 = vld [vmem:[%s1744_s11 + $0x20] sm:$0xff]   ;;  %v1279_v34 = vld [vmem:[%s1744_s11 + $0x28] sm:$0xff]  }
 0x381   :  { %v480_v48 = vsel %vm91_vm4, %v479_v43, %v471_v42 }
 0x382   :  { %v512_v44 = vsel %vm94_vm5, %v510_v40, %v1228_v39  ;;  %v513_v45 = vsel %vm94_vm5, %v511_v41, %v1229_v38 }
 0x383   :  { %v516_v46 = vrot.slane %v512_v44, 3  ;;  %v517_v47 = vrot.slane %v513_v45, 3  ;;  %v477_v49 = vpop.permute.xlu1 %476 }
 0x384   :  { %v481_v50 = vsel %vm94_vm5, %v480_v48, %v477_v49 }
 0x385   :  { %v518_v51 = vsel %vm78_vm2, %v516_v46, %v517_v47  ;;  %v521_v52 = vsel %vm58_vm0, %v481_v50, %v516_v46 }
 0x386   :  { %v522_v53 = vpack.c.bf16 %v518_v51, %v521_v52 }
 0x388   :  { %1119 = vmatmul.mubr.msk.bf16.vlgmr.msra.gmra.mrb[4].mxu1 %vm182_vm6, %v522_v53 }
 0x389   :  { %1138 = vmatprep.mubr.msk.bf16.mxu1 %vm1340_vm11, %v1339_v15  ;;  %1123 = vmatpush3.bf16.msra.mxu1 %v1274_v26 }
 0x38a   :  { %1124 = vmatprep.subr.bf16.mxu1 %v1339_v15 }
 0x38d   :  { %1125 = vmatpush3.bf16.msra.mxu1 %v1275_v28 }
 0x38e   :  { %1126 = vmatprep.subr.bf16.mxu1 %v1339_v15 }
 0x391   :  { %1127 = vmatpush3.bf16.msra.mxu1 %v1276_v31 }
 0x392   :  { %1128 = vmatprep.subr.bf16.mxu1 %v1339_v15 }
 0x395   :  { %1129 = vmatpush3.bf16.msra.mxu1 %v1277_v32 }
 0x396   :  { %1130 = vmatprep.subr.bf16.mxu1 %v1339_v15 }
 0x399   :  { %1131 = vmatpush3.bf16.msra.mxu1 %v1278_v33 }
 0x39a   :  { %1132 = vmatprep.subr.bf16.mxu1 %v1339_v15 }
 0x39d   :  { %1133 = vmatpush3.bf16.msra.mxu1 %v1279_v34 }
 0x39e   :  { %1134 = vmatprep.subr.bf16.mxu1 %v1339_v15 }
 0x45b   :  { %v599_v2 = vpop.f32.mrb[4].mxu1 }
 0x45c   :  { %v600_v5 = vadd.f32 %v1034_v3, %v599_v2  ;;  %v1120_v6 = vpop.f32.mrb[5].mxu1  ;;  %v1280_v2 = vld [vmem:[%s1744_s11 + $0x30] sm:$0xff]  }
 0x45d   :  { %v602_v7 = vpop.f32.mrb[6].mxu1  ;;  %1135 = vmatpush3.bf16.msra.mxu1 %v1280_v2 }
 0x45e   :  { %v1637_v8 = vmax.f32 %v600_v5, 0.0  ;;  %v603_v9 = vadd.f32 %v1034_v3, %v602_v7  ;;  %v1121_v10 = vpop.f32.mrb[7].mxu1  ;;  %1136 = vmatprep.subr.bf16.mxu1 %v1339_v15  ;;  %v1040_v5 = vld [vmem:[%s1743_s10] ss:$0 sm:$0xff] }
 0x45f   :  { %v1056_v15 = vld [vmem:[%s1745_s12] ss:$0 sm:$0xff]  ;;  %s1344_s12 = smov 120  }
 0x460   :  { %v607_v12 = vmax.f32 %v603_v9, 0.0  ;;  %v609_v13 = vrot.slane %v1637_v8, 1  ;;  %v623_v14 = vrot.slane %v1637_v8, 5  ;;  %v613_v24 = vrot.slane %v1637_v8, 2 }
 0x461   :  { %v627_v25 = vrot.slane %v1637_v8, 6  ;;  %v617_v30 = vrot.slane %v1637_v8, 3  ;;  %v621_v48 = vrot.slane %v1637_v8, 4  ;;  %1137 = vmatpush3.bf16.msra.mxu1 %v1281_v4 }
 0x462   :  { %v1230_v16 = vpack.i.bf16 %v623_v14, %v609_v13  ;;  %v642_v17 = vrot.slane %v607_v12, 2  ;;  %v656_v18 = vrot.slane %v607_v12, 6  ;;  %v638_v19 = vrot.slane %v607_v12, 1 }
 0x463   :  { %v652_v20 = vrot.slane %v607_v12, 5  ;;  %v646_v27 = vrot.slane %v607_v12, 3  ;;  %v1240_v29 = vpack.i.bf16 %v627_v25, %v613_v24  ;;  %v650_v38 = vrot.slane %v607_v12, 4 }
 0x464   :  { %1231 = vrot.lane.b32.xlu0 %v1230_v16, %s1335_s19  ;;  %v1245_v22 = vpack.i.bf16 %v656_v18, %v642_v17 }
 0x465   :  { %v1235_v23 = vpack.i.bf16 %v652_v20, %v638_v19 }
 0x466   :  { %1246 = vrot.lane.b32.xlu1 %v1245_v22, %s1342_s27 }
 0x468   :  { %1236 = vrot.lane.b32.xlu0 %v1235_v23, %s1335_s19 }
 0x46a   :  { %647 = vrot.lane.b32.xlu1 %v646_v27, %s1343_s30 }
 0x46c   :  { %1241 = vrot.lane.b32.xlu0 %v1240_v29, %s1342_s27 }
 0x46e   :  { %618 = vrot.lane.b32.xlu1 %v617_v30, %s1343_s30 }
 0x4d6   :  { %v1232_v35 = vpop.permute.xlu0 %1231 }
 0x4d7   :  { %v1234_v41 = vunpack.i.h.bf16 %v1232_v35  ;;  %v1233_v42 = vunpack.i.l.bf16 %v1232_v35 }
 0x4d8   :  { %v1247_v36 = vpop.permute.xlu1 %1246 }
 0x4d9   :  { %v1249_v43 = vunpack.i.h.bf16 %v1247_v36  ;;  %v1248_v44 = vunpack.i.l.bf16 %v1247_v36  ;;  %v635_v56 = vsel %vm91_vm4, %v621_v48, %v1234_v41  ;;  %v631_v58 = vsel %vm91_vm4, %v1637_v8, %v1233_v42 }
 0x4da   :  { %v1237_v37 = vpop.permute.xlu0 %1236 }
 0x4db   :  { %v1239_v39 = vunpack.i.h.bf16 %v1237_v37  ;;  %v1238_v40 = vunpack.i.l.bf16 %v1237_v37 }
 0x4dc   :  { %v648_v45 = vpop.permute.xlu1 %647 }
 0x4dd   :  { %v663_v46 = vsel %vm91_vm4, %v650_v38, %v1239_v39  ;;  %v660_v47 = vsel %vm91_vm4, %v1637_v8, %v1238_v40 }
 0x4de   :  { %v664_v49 = vsel %vm182_vm6, %v663_v46, %v1249_v43  ;;  %v661_v50 = vsel %vm182_vm6, %v660_v47, %v1248_v44  ;;  %v1242_v51 = vpop.permute.xlu0 %1241 }
 0x4df   :  { %v668_v52 = vrot.slane %v664_v49, 6  ;;  %v662_v53 = vsel %vm633_vm12, %v661_v50, %v648_v45  ;;  %v1244_v54 = vunpack.i.h.bf16 %v1242_v51  ;;  %v1243_v55 = vunpack.i.l.bf16 %v1242_v51 }
 0x4e0   :  { %v667_v57 = vrot.slane %v662_v53, 6  ;;  %v619_v59 = vpop.permute.xlu1 %618 }
 0x4e1   :  { %v636_v60 = vsel %vm182_vm6, %v635_v56, %v1244_v54  ;;  %v632_v61 = vsel %vm182_vm6, %v631_v58, %v1243_v55 }
 0x4e2   :  { %v634_v62 = vsel %vm633_vm12, %v632_v61, %v619_v59  ;;  %v673_v63 = vsel %vm671_vm13, %v636_v60, %v668_v52 }
 0x4e3   :  { %v672_v0 = vsel %vm671_vm13, %v634_v62, %v667_v57  ;;  %v675_v1 = vpack.c.bf16 %v673_v63, %v673_v63 }
 0x4e4   :  { %v674_v3 = vpack.c.bf16 %v672_v0, %v672_v0 }
 0x4e5   :  { %1055 = vmatprep.mubr.msk.bf16.mxu0 %vm633_vm12, %v675_v1 }
 0x4e6   :  { %831 = vmatmul.mubr.bf16.vlgmr.msra.gmra.mrb[4].mxu0 %v674_v3 }
 0x5b9   :  { %v832_v6 = vpop.f32.mrb[4].mxu0 }
 0x5ba   :  { %v833_v7 = vadd.f32 %v1040_v5, %v832_v6  ;;  %v834_v8 = vpop.f32.mrb[5].mxu0 }
 0x5bb   :  { %v835_v9 = vpop.f32.mrb[6].mxu0 }
 0x5bc   :  { %v838_v10 = vmax.f32 %v833_v7, 0.0  ;;  %v836_v11 = vpop.f32.mrb[7].mxu0 }
 0x5be   :  { %v839_v12 = vpack.c.bf16 %v838_v10, %v838_v10 }
 0x5c0   :  { %1139 = vmatmul.mubr.bf16.vlgmr.msra.gmra.mrb[8].mxu1 %v839_v12 }
 0x693   :  { %v945_v13 = vpop.f32.mrb[8].mxu1 }
 0x694   :  { %v946_v14 = vadd.f32 %v1056_v15, %v945_v13  ;;  %v1140_v16 = vpop.f32.mrb[9].mxu1 }
 0x695   :  { %v948_v17 = vpop.f32.mrb[10].mxu1 }
 0x696   :  { %v1141_v18 = vpop.f32.mrb[11].mxu1  ;;  %v967_v19 = vmul.f32 0.5, %v946_v14  ;;  %v951_v22 = vmul.f32 1.442695, %v946_v14 }
 0x698   :  { %v968_v20 = vmul.f32 %v967_v19, %v946_v14  ;;  %1284 = vpow2.f32 %v951_v22 }
 0x69a   :  { %970 = vrot.lane.b32.xlu0 %v968_v20, %s1338_s3 }
 0x69e   :  { %955 = vrot.lane.b32.xlu0 %v953_v21, %s1338_s3  ;;  %s998_s3 = sshll.u32 %s1345_s13, 4  ;;  %s999_s3 = int_to_ptr.vmem [resolvable:$true] %s998_s3 }
 0x69f   :  { %s1286_s8 = scalar_lea.vmem %s999_s3, 32  ;;  %p1291_p1 = scmp.lt.s32.totalorder %s999_s3, %s999_s3 }
 0x6a0   :  { %p1287_p0 = scmp.ne.s32.totalorder %s999_s3, %s1286_s8  ;;  %p1292_p2 = scmp.lt.s32.totalorder %s1286_s8, %s1286_s8 }
 0x6a2   :  { %v1285_v23 = vpop.eup %1284  ;;  %p1293_p3 = por %p1292_p2, %p1291_p1 }
 0x6a3   :  { %v966_v24 = vmul.f32 0.5, %v1285_v23 }
 0x6a4   :  { %p1294_p4 = pnand %p1293_p3, %p1287_p0 }
 0x70c   :  { %v971_v25 = vpop.permute.xlu0 %970 }
 0x70d   :  { %v973_v26 = vadd.f32 %v971_v25, %v966_v24 }
 0x70f   :  { %v974_v27 = vsub.f32 %v973_v26, %v967_v19 }
 0x710   :  { %v956_v28 = vpop.permute.xlu0 %955 }
 0x711   :  { %v1065_v29 = vadd.f32 -0.5, %v974_v27  ;;  %v958_v30 = vmul.f32 %v1285_v23, %v956_v28 }
 0x713   :  { %977 = vrot.lane.b32.xlu1 %v1065_v29, %s1344_s12  ;;  %960 = vrot.lane.b32.xlu0 %v958_v30, %s1344_s12 }
 0x785   :  { %v978_v31 = vpop.permute.xlu1 %977  ;;  %v961_v32 = vpop.permute.xlu0 %960 }
 0x786   :  { %v963_v33 = vadd.f32 %v961_v32, %v946_v14  ;;  %v980_v34 = vsel %vm964_vm14, %v978_v31, 0.0 }
 0x787   :  { %981 = vadd.xlane.f32.xlu1 %v980_v34 }
 0x788   :  { %965 = vst.msk [vmem:[#allocation2] sm:$0x3] %vm964_vm14, %v963_v33 }
 0x789   :  { %1297 = shalt.err (!%p1294_p4)
}
 0x78a   :  { %s1298_s4 = scalar_lea.hbm %s1747_s14, 32 }
 0x78b   :  { %p1299_p5 = scmp.ne.s32.totalorder %s1747_s14, %s1298_s4  ;;  %p1302_p6 = scmp.lt.u32.totalorder %s1298_s4, %s1747_s14 }
 0x78d   :  { %p1304_p7 = pnand %p1302_p6, %p1299_p5 }
 0x78f   :  { %1307 = shalt.err (!%p1304_p7)
}
 0x790   :  { %1001 = dma.vmem_to_hbm [thread:$0]  %s999_s3, 32, %s1747_s14, [#allocation3]   ;;  %vm990_vm15 = vcmask 0  }
 0x791   :  { %s1346_s19 = smov [#allocation4]  }
 0x792   :  { %s1008_s18 = sshll.u32 %s1346_s19, 4  ;;  %s1009_s18 = int_to_ptr.vmem [resolvable:$true] %s1008_s18 }
 0x793   :  { %s1308_s1 = scalar_lea.vmem %s1009_s18, 16  ;;  %s1312_s5 = scalar_lea.vmem %s1009_s18, 32 }
 0x794   :  { %p1309_p8 = scmp.ne.s32.totalorder %s1009_s18, %s1308_s1  ;;  %p1313_p9 = scmp.lt.s32.totalorder %s1009_s18, %s1009_s18 }
 0x795   :  { %p1314_p10 = scmp.lt.s32.totalorder %s1312_s5, %s1308_s1 }
 0x797   :  { %p1315_p11 = por %p1314_p10, %p1313_p9 }
 0x799   :  { %p1316_p12 = pnand %p1315_p11, %p1309_p8 }
 0x814   :  { %v982_v35 = vpop.xlane.xlu1 %981 }
 0x815   :  { %v983_v36 = vsel %vm321_vm9, %v982_v35, 0.0 }
 0x816   :  { %v984_v37 = vrot.slane %v983_v36, 4 }
 0x818   :  { %v985_v38 = vadd.f32 %v984_v37, %v983_v36 }
 0x81a   :  { %v986_v39 = vrot.slane %v985_v38, 2 }
 0x81c   :  { %v987_v40 = vadd.f32 %v986_v39, %v985_v38 }
 0x81e   :  { %v988_v41 = vrot.slane %v987_v40, 1 }
 0x820   :  { %v989_v42 = vadd.f32 %v988_v41, %v987_v40 }
 0x822   :  { %991 = vst.msk [vmem:[#allocation4] sm:$0x1] %vm990_vm15, %v989_v42 }
 0x823   :  { %1319 = shalt.err (!%p1316_p12)
}
 0x824   :  { %s1320_s6 = scalar_lea.hbm %s1748_s15, 16 }
 0x825   :  { %p1321_p13 = scmp.ne.s32.totalorder %s1748_s15, %s1320_s6  ;;  %p1324_p0 = scmp.lt.u32.totalorder %s1320_s6, %s1748_s15 }
 0x827   :  { %p1326_p1 = pnand %p1324_p0, %p1321_p13 }
 0x829   :  { %1329 = shalt.err (!%p1326_p1)
}
 0x82a   :  { %1011 = dma.vmem_to_hbm [thread:$0]  %s1009_s18, 16, %s1748_s15, [#allocation5]  }
 0x82b   :  { %1330 = dma.done.wait [#allocation3], 32  }
 0x82c   :  { %1331 = vsyncadd [#allocation3], 4294967264 }
 0x82d   :  { %1332 = dma.done.wait [#allocation5], 16  }
 0x82e   :  { %1333 = vsyncadd [#allocation5], 4294967280 }
 0x82f   :  { %1018 = vsyncpa [#allocation3], 1 }
 0x830   :  { %1019 = vsyncpa [#allocation5], 1 }

</bundles_post_ra>
